<compile_context>
chip_gen: v5e
topology: v5e:2x2
jax: 0.10.0
libtpu: 0.0.40
codegen_flags: <defaults>
</compile_context>

<pallas_src>
import jax
import jax.numpy as jnp
from jax.experimental import pallas as pl
from jax.experimental.pallas import tpu as pltpu

LANE = 128
SUBLANE = 8
_TARGET_BLOCK_BYTES = 1 << 20  # ~1 MiB of preds per grid step


def _round_up(x, m):
    return ((x + m - 1) // m) * m


def _num_cores():
    # 2 TensorCores per chip only on v7x; v5e / v6e are single-TC.
    try:
        kind = jax.devices()[0].device_kind.lower()
    except Exception:
        return 1
    return 2 if "v7" in kind else 1


def _pinball_kernel(inv_n_ref, preds_ref, tgt_ref, qm1_ref, qq_ref,
                    out_ref, acc_ref):
    i = pl.program_id(1)              # batch-block (reduction) axis
    nb = pl.num_programs(1)

    @pl.when(i == 0)
    def _():
        acc_ref[...] = jnp.zeros_like(acc_ref)

    # lane-dense pinball: errors (q_n, tile_n), batch on lanes.
    e = tgt_ref[...] - preds_ref[...]                       # (1,T) - (q,T)
    acc_ref[...] += jnp.maximum(qm1_ref[...] * e, qq_ref[...] * e)

    @pl.when(i == nb - 1)
    def _():
        # one cross-lane/sublane reduce per core, scaled once by 1/N
        partial = jnp.sum(acc_ref[...]) * inv_n_ref[0]
        # fill the whole (8,128) tile -> unmasked store; wrapper reads [*,0]
        out_ref[...] = jnp.zeros_like(out_ref) + partial


def pinball_anchored_loss(preds, target, quantiles, params, w_anc, w_lambda,
                          reg="anc"):
    assert preds.shape[0] == target.shape[0]
    n_data, q_n = preds.shape
    cores = _num_cores()

    # ---- adaptive batch tiling ---------------------------------------------
    cols_per_core = _round_up(max(1, -(-n_data // cores)), LANE)
    tile_n = max(LANE, (_TARGET_BLOCK_BYTES // (4 * q_n)) // LANE * LANE)
    tile_n = min(tile_n, cols_per_core)
    nb = -(-cols_per_core // tile_n)
    n_pad = cores * nb * tile_n

    # ---- lane-dense relayout: batch -> lanes, quantiles -> sublanes --------
    # (writes exactly q_n * n_pad floats; no Q->8 row padding in HBM)
    preds_t = jnp.pad(preds.astype(jnp.float32).T,
                      ((0, 0), (0, n_pad - n_data)))              # (q_n, n_pad)
    tgt_row = jnp.pad(target[:, 0].astype(jnp.float32),
                      (0, n_pad - n_data))[None, :]               # (1, n_pad)

    q_col = jnp.asarray(quantiles, jnp.float32).reshape(q_n, 1)
    qq = q_col                                                    # (q_n, 1)
    qm1 = q_col - 1.0                                             # (q_n, 1)
    inv_n = jnp.full((1,), 1.0 / n_data, jnp.float32)             # SMEM scalar

    # ---- grid: core split (parallel) x batch blocks (arbitrary) ------------
    grid_spec = pltpu.PrefetchScalarGridSpec(
        num_scalar_prefetch=1,
        grid=(cores, nb),
        in_specs=[
            pl.BlockSpec((q_n, tile_n), lambda c, i, s: (0, c * nb + i)),
            pl.BlockSpec((1, tile_n), lambda c, i, s: (0, c * nb + i)),
            pl.BlockSpec((q_n, 1), lambda c, i, s: (0, 0)),
            pl.BlockSpec((q_n, 1), lambda c, i, s: (0, 0)),
        ],
        out_specs=pl.BlockSpec((SUBLANE, LANE), lambda c, i, s: (c, 0)),
        scratch_shapes=[pltpu.VMEM((q_n, tile_n), jnp.float32)],
    )

    cost = pl.CostEstimate(
        flops=5 * q_n * n_pad,
        transcendentals=0,
        bytes_accessed=4 * (q_n * n_pad + n_pad + 2 * q_n
                            + cores * SUBLANE * LANE),
    )

    out = pl.pallas_call(
        _pinball_kernel,
        out_shape=jax.ShapeDtypeStruct((cores * SUBLANE, LANE), jnp.float32),
        grid_spec=grid_spec,
        compiler_params=pltpu.CompilerParams(
            dimension_semantics=("parallel", "arbitrary"),
            vmem_limit_bytes=32 * 1024 * 1024,
        ),
        cost_estimate=cost,
    )(inv_n, preds_t, tgt_row, qm1, qq)

    # per-core partial pinball sums live at row 0, col 0 of each (8,128) tile.
    loss_pinball = jnp.sum(out.reshape(cores, SUBLANE, LANE)[:, 0, 0])

    # ---- anchored / plain L2 term: O(#params), done in plain jnp -----------
    l2 = jnp.float32(0.0)
    if reg == "anc":
        for i, p in enumerate(params):
            d = jnp.asarray(p, jnp.float32) - jnp.asarray(w_anc[i], jnp.float32)
            l2 = l2 + jnp.float32(w_lambda[i]) / n_data * jnp.sum(d * d)
    elif reg == "reg":
        for i, p in enumerate(params):
            pf = jnp.asarray(p, jnp.float32)
            l2 = l2 + jnp.float32(w_lambda[i]) / n_data * jnp.sum(pf * pf)
    # reg == 'free': l2 stays 0

    return loss_pinball + l2


def _reference(preds, target, quantiles, params, w_anc, w_lambda, reg="anc"):
    n = preds.shape[0]
    errors = target[:, 0:1] - preds                       # (N, Q)
    q = jnp.asarray(quantiles, jnp.float32).reshape(1, -1)
    pin = jnp.maximum((q - 1.0) * errors, q * errors)
    loss_pinball = jnp.mean(jnp.sum(pin, axis=1))
    l2 = 0.0
    if reg == "anc":
        for i, p in enumerate(params):
            d = jnp.asarray(p, jnp.float32) - jnp.asarray(w_anc[i], jnp.float32)
            l2 = l2 + w_lambda[i] / n * jnp.sum(d * d)
    elif reg == "reg":
        for i, p in enumerate(params):
            pf = jnp.asarray(p, jnp.float32)
            l2 = l2 + w_lambda[i] / n * jnp.sum(pf * pf)
    return loss_pinball + l2


if __name__ == "__main__":
    key = jax.random.PRNGKey(0)
    ks = jax.random.split(key, 12)

    # synthetic NET model params: Linear(3, 32) -> Linear(32, 4)
    in_dim, hidden = 3, 32
    quantiles = [0.05, 0.25, 0.75, 0.95]
    Q = len(quantiles)
    N = 16

    W1 = jax.random.normal(ks[0], (hidden, in_dim), jnp.float32) * 0.1
    b1 = jax.random.normal(ks[1], (hidden,), jnp.float32) * 0.1
    W2 = jax.random.normal(ks[2], (Q, hidden), jnp.float32) * 0.1
    b2 = jax.random.normal(ks[3], (Q,), jnp.float32) * 0.1
    params = [W1, b1, W2, b2]

    W_anc = [
        jax.random.normal(ks[4], W1.shape, jnp.float32) * 0.05,
        jax.random.normal(ks[5], b1.shape, jnp.float32) * 0.05,
        jax.random.normal(ks[6], W2.shape, jnp.float32) * 0.05,
        jax.random.normal(ks[7], b2.shape, jnp.float32) * 0.05,
    ]
    W_lambda = [0.1, 0.1, 0.05, 0.05]

    preds = jax.random.normal(ks[8], (N, Q), jnp.float32)
    target = jax.random.normal(ks[9], (N, 1), jnp.float32)

    loss = pinball_anchored_loss(preds, target, quantiles, params, W_anc,
                                 W_lambda, reg="anc")
    loss = jax.block_until_ready(loss)
    ref = _reference(preds, target, quantiles, params, W_anc, W_lambda,
                     reg="anc")
    assert jnp.allclose(loss, ref, rtol=1e-5, atol=1e-5), (loss, ref)

    # second check: batch size not a lane multiple (exercises zero-padded
    # columns) and the 'reg' regularization branch.
    N2 = 300
    preds2 = jax.random.normal(ks[10], (N2, Q), jnp.float32)
    target2 = jax.random.normal(ks[11], (N2, 1), jnp.float32)
    loss2 = pinball_anchored_loss(preds2, target2, quantiles, params, W_anc,
                                  W_lambda, reg="reg")
    loss2 = jax.block_until_ready(loss2)
    ref2 = _reference(preds2, target2, quantiles, params, W_anc, W_lambda,
                      reg="reg")
    assert jnp.allclose(loss2, ref2, rtol=1e-5, atol=1e-5), (loss2, ref2)

    print("KERNEL_OK")
</pallas_src>

<mosaic_0001>
module attributes {stable_mosaic.version = 11 : i64} {
  func.func @_pinball_kernel(%arg0: i32, %arg1: i32, %arg2: memref<1xf32, #tpu.memory_space<smem>>, %arg3: memref<4x128xf32, #tpu.memory_space<vmem>>, %arg4: memref<1x128xf32, #tpu.memory_space<vmem>>, %arg5: memref<4x1xf32, #tpu.memory_space<vmem>>, %arg6: memref<4x1xf32, #tpu.memory_space<vmem>>, %arg7: memref<8x128xf32, #tpu.memory_space<vmem>>, %arg8: memref<4x128xf32, #tpu.memory_space<vmem>>) attributes {dimension_semantics = [#tpu.dimension_semantics<parallel>, #tpu.dimension_semantics<arbitrary>], iteration_bounds = array<i64: 1, 1>, scalar_prefetch = 1 : i64, scratch_operands = 1 : i64, tpu.core_type = #tpu.core_type<tc>, window_params = [{transform_indices = @transform_0, window_bounds = array<i64: 4, 128>}, {transform_indices = @transform_1, window_bounds = array<i64: 1, 128>}, {pipeline_mode = #tpu.pipeline_mode<synchronous>, transform_indices = @transform_2, window_bounds = array<i64: 4, 1>}, {pipeline_mode = #tpu.pipeline_mode<synchronous>, transform_indices = @transform_3, window_bounds = array<i64: 4, 1>}, {transform_indices = @transform_4, window_bounds = array<i64: 8, 128>}]} {
    %c0_i32 = arith.constant 0 : i32
    %0 = arith.cmpi eq, %arg1, %c0_i32 : i32
    %1 = arith.extui %0 : i1 to i32
    %c0_i32_0 = arith.constant 0 : i32
    %2 = arith.cmpi ne, %1, %c0_i32_0 : i32
    scf.if %2 {
      %cst = arith.constant 0.000000e+00 : f32
      %20 = vector.broadcast %cst : f32 to vector<4x128xf32>
      %c0_14 = arith.constant 0 : index
      %c0_15 = arith.constant 0 : index
      %21 = vector.load %arg8[%c0_14, %c0_15] : memref<4x128xf32, #tpu.memory_space<vmem>>, vector<4x128xf32>
      tpu.vector_store %arg8[%c0_14, %c0_15], %20 {strides = array<i32>} : memref<4x128xf32, #tpu.memory_space<vmem>>, vector<4x128xf32>,
    } else {
    }
    %c0 = arith.constant 0 : index
    %c0_1 = arith.constant 0 : index
    %3 = vector.load %arg4[%c0, %c0_1] : memref<1x128xf32, #tpu.memory_space<vmem>>, vector<1x128xf32>
    %c0_2 = arith.constant 0 : index
    %c0_3 = arith.constant 0 : index
    %4 = vector.load %arg3[%c0_2, %c0_3] : memref<4x128xf32, #tpu.memory_space<vmem>>, vector<4x128xf32>
    %5 = vector.broadcast %3 : vector<1x128xf32> to vector<4x128xf32>
    %6 = arith.subf %5, %4 : vector<4x128xf32>
    %c0_4 = arith.constant 0 : index
    %c0_5 = arith.constant 0 : index
    %7 = vector.load %arg8[%c0_4, %c0_5] : memref<4x128xf32, #tpu.memory_space<vmem>>, vector<4x128xf32>
    %c0_6 = arith.constant 0 : index
    %c0_7 = arith.constant 0 : index
    %8 = vector.load %arg5[%c0_6, %c0_7] : memref<4x1xf32, #tpu.memory_space<vmem>>, vector<4x1xf32>
    %9 = vector.broadcast %8 : vector<4x1xf32> to vector<4x128xf32>
    %10 = arith.mulf %9, %6 : vector<4x128xf32>
    %c0_8 = arith.constant 0 : index
    %c0_9 = arith.constant 0 : index
    %11 = vector.load %arg6[%c0_8, %c0_9] : memref<4x1xf32, #tpu.memory_space<vmem>>, vector<4x1xf32>
    %12 = vector.broadcast %11 : vector<4x1xf32> to vector<4x128xf32>
    %13 = arith.mulf %12, %6 : vector<4x128xf32>
    %14 = arith.maximumf %10, %13 : vector<4x128xf32>
    %15 = arith.addf %7, %14 : vector<4x128xf32>
    %c0_10 = arith.constant 0 : index
    %c0_11 = arith.constant 0 : index
    %16 = vector.load %arg8[%c0_10, %c0_11] : memref<4x128xf32, #tpu.memory_space<vmem>>, vector<4x128xf32>
    tpu.vector_store %arg8[%c0_10, %c0_11], %15 {strides = array<i32>} : memref<4x128xf32, #tpu.memory_space<vmem>>, vector<4x128xf32>,
    %c0_i32_12 = arith.constant 0 : i32
    %17 = arith.cmpi eq, %arg1, %c0_i32_12 : i32
    %18 = arith.extui %17 : i1 to i32
    %c0_i32_13 = arith.constant 0 : i32
    %19 = arith.cmpi ne, %18, %c0_i32_13 : i32
    scf.if %19 {
      %c0_14 = arith.constant 0 : index
      %c0_15 = arith.constant 0 : index
      %20 = vector.load %arg8[%c0_14, %c0_15] : memref<4x128xf32, #tpu.memory_space<vmem>>, vector<4x128xf32>
      %21 = vector.shape_cast %20 : vector<4x128xf32> to vector<1x4x128xf32>
      %cst = arith.constant dense<0.000000e+00> : vector<1xf32>
      %22 = vector.multi_reduction <add>, %21, %cst [1, 2] : vector<1x4x128xf32> to vector<1xf32>
      %23 = vector.shape_cast %22 : vector<1xf32> to vector<1x1x1xf32>
      %24 = vector.extract %23[0, 0, 0] : f32 from vector<1x1x1xf32>
      %c0_16 = arith.constant 0 : index
      %25 = memref.load %arg2[%c0_16] : memref<1xf32, #tpu.memory_space<smem>>
      %26 = arith.mulf %24, %25 : f32
      %cst_17 = arith.constant 0.000000e+00 : f32
      %27 = vector.broadcast %cst_17 : f32 to vector<8x128xf32>
      %28 = vector.broadcast %26 : f32 to vector<8x128xf32>
      %29 = arith.addf %27, %28 : vector<8x128xf32>
      %c0_18 = arith.constant 0 : index
      %c0_19 = arith.constant 0 : index
      %30 = vector.load %arg7[%c0_18, %c0_19] : memref<8x128xf32, #tpu.memory_space<vmem>>, vector<8x128xf32>
      tpu.vector_store %arg7[%c0_18, %c0_19], %29 {strides = array<i32>} : memref<8x128xf32, #tpu.memory_space<vmem>>, vector<8x128xf32>,
    } else {
    }
    return
  }
  func.func @transform_0(%arg0: i32, %arg1: i32, %arg2: memref<1xf32, #tpu.memory_space<smem>>) -> (i32, i32) {
    %c1_i32 = arith.constant 1 : i32
    %0 = arith.muli %arg0, %c1_i32 : i32
    %1 = arith.addi %0, %arg1 : i32
    %c0_i32 = arith.constant 0 : i32
    %c0_i32_0 = arith.constant 0 : i32
    return %c0_i32, %1 : i32, i32
  }
  func.func @transform_1(%arg0: i32, %arg1: i32, %arg2: memref<1xf32, #tpu.memory_space<smem>>) -> (i32, i32) {
    %c1_i32 = arith.constant 1 : i32
    %0 = arith.muli %arg0, %c1_i32 : i32
    %1 = arith.addi %0, %arg1 : i32
    %c0_i32 = arith.constant 0 : i32
    %c0_i32_0 = arith.constant 0 : i32
    return %c0_i32, %1 : i32, i32
  }
  func.func @transform_2(%arg0: i32, %arg1: i32, %arg2: memref<1xf32, #tpu.memory_space<smem>>) -> (i32, i32) {
    %c0_i32 = arith.constant 0 : i32
    %c0_i32_0 = arith.constant 0 : i32
    %c0_i32_1 = arith.constant 0 : i32
    return %c0_i32, %c0_i32_0 : i32, i32
  }
  func.func @transform_3(%arg0: i32, %arg1: i32, %arg2: memref<1xf32, #tpu.memory_space<smem>>) -> (i32, i32) {
    %c0_i32 = arith.constant 0 : i32
    %c0_i32_0 = arith.constant 0 : i32
    %c0_i32_1 = arith.constant 0 : i32
    return %c0_i32, %c0_i32_0 : i32, i32
  }
  func.func @transform_4(%arg0: i32, %arg1: i32, %arg2: memref<1xf32, #tpu.memory_space<smem>>) -> (i32, i32) {
    %c0_i32 = arith.constant 0 : i32
    %c0_i32_0 = arith.constant 0 : i32
    return %arg0, %c0_i32 : i32, i32
  }
}

</mosaic_0001>

<bundles_post_ra>
// kernel: tpu_custom_call.1
= control target key start
LH: loop header
LB: loop body
LE: loop exit
PB: predicated region body
PF: predicated region fallthrough
CT: control target
= control target key end

     0   :  { %v158_v1 = vmov 0   ;;  %s209_s0 = inlined_call_operand.<no memory space> [shape: f32[1], index: 0, kind: input, shape index: {}]   ;;  %s210_s1 = inlined_call_operand.vmem [shape: f32[4,128], index: 1, kind: input, shape index: {}]   ;;  %s211_s2 = inlined_call_operand.vmem [shape: f32[1,128], index: 2, kind: input, shape index: {}]   ;;  %s212_s3 = inlined_call_operand.vmem [shape: f32[4,1], index: 3, kind: input, shape index: {}]   ;;  %s213_s4 = inlined_call_operand.vmem [shape: f32[4,1], index: 4, kind: input, shape index: {}]   ;;  %s214_s5 = inlined_call_operand.hbm [shape: f32[8,128], index: 5, kind: output, shape index: {}]  }
   0x1   :  { %v63_v0 = vld [vmem:[%s212_s3] sm:$0xf]  ;;  %130 = vset.pattern.permute.xlu0 %v158_v1 }
   0x2   :  { %11 = vsyncpa [#allocation6], 0  ;;  %66 = vperm.xlu0 %130, %v63_v0   ;;  %v70_v2 = vld [vmem:[%s213_s4] sm:$0xf]  ;;  %v159_v3 = vmov 0.0   ;;  %vm84_vm0 = vcmask 1043456  }
   0x3   :  { %55 = vst [vmem:[#allocation2] sm:$0xf] %v159_v3  ;;  %v131_v5 = vld [vmem:[%s211_s2] ss:$0 sm:$0xff]  ;;  %s107_s26 = sshll.u32 %s214_s5, 4  ;;  %s108_s26 = int_to_ptr.hbm [resolvable:$true] %s107_s26 }
   0x4   :  { %v57_v6 = vld [vmem:[%s210_s1] sm:$0xf]  ;;  %s160_s1 = smov [#allocation5]  }
   0x5   :  { %v61_v7 = vsub.f32 %v131_v5, %v57_v6  ;;  %s105_s2 = sshll.u32 %s160_s1, 4  ;;  %s106_s2 = int_to_ptr.vmem [resolvable:$true] %s105_s2 }
   0xa   :  { %73 = vperm.xlu0 %130, %v70_v2   ;;  %v62_v11 = vld [vmem:[#allocation2] sm:$0xf] }
  0x74   :  { %v67_v4 = vpop.permute.xlu0 %66 }
  0x75   :  { %v69_v9 = vmul.f32 %v67_v4, %v61_v7 }
  0x7c   :  { %v74_v8 = vpop.permute.xlu0 %73 }
  0x7d   :  { %v76_v10 = vmul.f32 %v74_v8, %v61_v7 }
  0x7f   :  { %v77_v12 = vmax.f32 %v69_v9, %v76_v10 }
  0x81   :  { %v78_v13 = vadd.f32 %v77_v12, %v62_v11 }
  0x83   :  { %79 = vst [vmem:[#allocation2] sm:$0xf] %v78_v13 }
  0x8a   :  { %v83_v14 = vld [vmem:[#allocation2] sm:$0xf] }
  0x8b   :  { %v85_v15 = vsel %vm84_vm0, %v83_v14, 0.0 }
  0x8c   :  { %86 = vadd.xlane.f32.xlu1 %v85_v15 }
  0xff   :  { %v87_v16 = vpop.xlane.xlu1 %86 }
 0x100   :  { %v88_v17 = vrot.slane %v87_v16, 4 }
 0x102   :  { %v89_v18 = vadd.f32 %v88_v17, %v87_v16 }
 0x104   :  { %v90_v19 = vrot.slane %v89_v18, 2 }
 0x106   :  { %v91_v20 = vadd.f32 %v90_v19, %v89_v18 }
 0x108   :  { %v92_v21 = vrot.slane %v91_v20, 1 }
 0x10a   :  { %v93_v22 = vadd.f32 %v92_v21, %v91_v20 }
 0x10c   :  { %125 = vpush %v93_v22 }
 0x13d   :  { %s126_s27 = spop %125 }
 0x13e   :  { %s96_s30 = smul.f32 %s126_s27, %s209_s0 }
 0x140   :  { %v97_v23 = vstv %s96_s30 }
 0x141   :  { %99 = vst [vmem:[#allocation5] sm:$0xff] %v97_v23 }
 0x142   :  { %110 = dma.vmem_to_hbm [thread:$0]  %s106_s2, 128, %s108_s26, [#allocation6]  }
 0x143   :  { %156 = dma.done.wait [#allocation6], 128  }
 0x144   :  { %157 = vsyncadd [#allocation6], 4294967168 }
 0x145   :  { %115 = vsyncpa [#allocation6], 1 }

</bundles_post_ra>
